<compile_context>
chip_gen: v6e
topology: v6e:2x2x1
jax: 0.10.0
libtpu: 0.0.40
codegen_flags: <defaults>
</compile_context>

<pallas_src>
import functools

import jax
import jax.numpy as jnp
from jax.experimental import pallas as pl
from jax.experimental.pallas import tpu as pltpu

INPUT_SIZE = 16   # FrozenLake-v0 observation_space.n
OUTPUT_SIZE = 4   # FrozenLake-v0 action_space.n
PACK = 8          # states packed per lane-dense row (8 states * 16 features = 128 lanes)


def _qnet_small_kernel(x_ref, wt_ref, b_ref, q_ref, a_ref):
    """Gridless small-batch path: q = x @ W^T + b, with fused greedy argmax."""
    q = jnp.dot(x_ref[...], wt_ref[...],
                preferred_element_type=jnp.float32) + b_ref[...]
    q_ref[...] = q.astype(q_ref.dtype)
    # First-max-wins argmax over the 4 Q-values (matches jnp/torch argmax).
    q_max = jnp.max(q, axis=-1, keepdims=True)
    lane = jax.lax.broadcasted_iota(jnp.int32, q.shape, 1)
    a_ref[...] = jnp.min(
        jnp.where(q == q_max, lane, jnp.int32(q.shape[-1])),
        axis=-1, keepdims=True)


def _qnet_packed_kernel(xp_ref, wp_ref, bp_ref, ws_ref, bs_ref, q_ref, a_ref):
    """Lane-dense packed path.

    xp_ref: [TB, 128]   8 states per row (lane-dense x view)
    wp_ref: [128, 32]   block-diagonal weight (8 copies of W^T on the diagonal)
    bp_ref: [1, 32]     bias tiled 8x (lane 4g+k holds bias[k])
    ws_ref: [4, 128, 8] per-action block-diagonal selection weights
    bs_ref: [4, 1, 8]   per-action bias
    q_ref : [TB, 32]    packed Q-values (8 states x 4 actions per row)
    a_ref : [TB, 8]     greedy action per state (lane-dense)
    """
    xp = xp_ref[...]
    q = jnp.dot(xp, wp_ref[...], preferred_element_type=jnp.float32) + bp_ref[...]
    q_ref[...] = q.astype(q_ref.dtype)

    # Per-action Q compacted to [TB, 8] via block-diagonal selection weights.
    # Same K=128 MXU accumulation as `q`, so results are bit-identical to the
    # corresponding q lanes -> the derived argmax is exactly argmax(q).
    s0 = jnp.dot(xp, ws_ref[0], preferred_element_type=jnp.float32) + bs_ref[0]
    s1 = jnp.dot(xp, ws_ref[1], preferred_element_type=jnp.float32) + bs_ref[1]
    s2 = jnp.dot(xp, ws_ref[2], preferred_element_type=jnp.float32) + bs_ref[2]
    s3 = jnp.dot(xp, ws_ref[3], preferred_element_type=jnp.float32) + bs_ref[3]
    gmax = jnp.maximum(jnp.maximum(s0, s1), jnp.maximum(s2, s3))
    a_ref[...] = jnp.where(
        s0 == gmax, 0,
        jnp.where(s1 == gmax, 1,
                  jnp.where(s2 == gmax, 2, 3))).astype(jnp.int32)


def _pack_params(weight, bias):
    """Build block-diagonal packed weights for the lane-dense layout (tiny, one-shot)."""
    eye = jnp.eye(PACK, dtype=weight.dtype)
    # w_pack[16g+i, 4h+k] = delta(g,h) * W[k,i]
    w_pack = jnp.einsum("gh,ki->gihk", eye, weight).reshape(
        PACK * INPUT_SIZE, PACK * OUTPUT_SIZE)
    b_pack = jnp.tile(bias.reshape(1, OUTPUT_SIZE), (1, PACK))          # [1, 32]
    # w_sel[k, 16g+i, h] = delta(g,h) * W[k,i]  (per-action compact selection)
    w_sel = jnp.einsum("gh,ki->kgih", eye, weight).reshape(
        OUTPUT_SIZE, PACK * INPUT_SIZE, PACK)
    b_sel = jnp.broadcast_to(bias.reshape(OUTPUT_SIZE, 1, 1),
                             (OUTPUT_SIZE, 1, PACK))                    # [4, 1, 8]
    return w_pack, b_pack, w_sel, b_sel


@functools.partial(jax.jit, static_argnames=("small_batch_cutoff", "max_tile_rows"))
def qnet_forward(x, weight, bias, *, small_batch_cutoff=256, max_tile_rows=1024):
    """Fused QNet forward.

    x:      [B, 16] float32
    weight: [4, 16] (PyTorch nn.Linear layout)
    bias:   [4]
    Returns (q, action): q = x @ W.T + b  [B, 4];  action = argmax(q, -1)  [B] int32.
    """
    B, f_in = x.shape
    f_out = weight.shape[0]

    if B <= small_batch_cutoff:
        # Latency path: no padding, no grid, whole problem in one VMEM shot.
        q, a = pl.pallas_call(
            _qnet_small_kernel,
            out_shape=(jax.ShapeDtypeStruct((B, f_out), x.dtype),
                       jax.ShapeDtypeStruct((B, 1), jnp.int32)),
            in_specs=[pl.BlockSpec(memory_space=pltpu.MemorySpace.VMEM)] * 3,
            out_specs=(pl.BlockSpec(memory_space=pltpu.MemorySpace.VMEM),
                       pl.BlockSpec(memory_space=pltpu.MemorySpace.VMEM)),
        )(x, weight.T, bias.reshape(1, f_out))
        return q, a[:, 0]

    # ---- Large-batch lane-dense packed path --------------------------------
    rows = pl.cdiv(B, PACK)                    # packed rows needed (8 states/row)
    n_tiles = pl.cdiv(rows, max_tile_rows)
    if n_tiles == 1:
        tile_rows = rows                       # block == full dim (exempt from /8)
    else:
        if n_tiles % 2:
            n_tiles += 1                       # even grid steps -> v7x TC balance
        tile_rows = pl.cdiv(rows, n_tiles)
        tile_rows = pl.cdiv(tile_rows, 8) * 8  # sublane-aligned block
    rows_pad = n_tiles * tile_rows
    b_pad = rows_pad * PACK
    if b_pad != B:                             # at most a few rows, never ~tile_b
        x = jnp.pad(x, ((0, b_pad - B), (0, 0)))
    xp = x.reshape(rows_pad, PACK * f_in)      # free row-major view, lane-dense

    w_pack, b_pack, w_sel, b_sel = _pack_params(weight, bias)

    qp, ap = pl.pallas_call(
        _qnet_packed_kernel,
        out_shape=(jax.ShapeDtypeStruct((rows_pad, PACK * f_out), x.dtype),
                   jax.ShapeDtypeStruct((rows_pad, PACK), jnp.int32)),
        grid=(n_tiles,),
        in_specs=[
            pl.BlockSpec((tile_rows, PACK * f_in), lambda i: (i, 0)),
            pl.BlockSpec((PACK * f_in, PACK * f_out), lambda i: (0, 0)),
            pl.BlockSpec((1, PACK * f_out), lambda i: (0, 0)),
            pl.BlockSpec((f_out, PACK * f_in, PACK), lambda i: (0, 0, 0)),
            pl.BlockSpec((f_out, 1, PACK), lambda i: (0, 0, 0)),
        ],
        out_specs=(
            pl.BlockSpec((tile_rows, PACK * f_out), lambda i: (i, 0)),
            pl.BlockSpec((tile_rows, PACK), lambda i: (i, 0)),
        ),
        compiler_params=pltpu.CompilerParams(
            dimension_semantics=("parallel",),
            vmem_limit_bytes=32 * 1024 * 1024,
        ),
    )(xp, w_pack, b_pack, w_sel, b_sel)

    q = qp.reshape(b_pad, f_out)
    a = ap.reshape(b_pad)
    if b_pad != B:
        q = q[:B]
        a = a[:B]
    return q, a


if __name__ == "__main__":
    key = jax.random.PRNGKey(0)
    kx, kw, kb = jax.random.split(key, 3)

    B = 2  # small batch of state encodings
    x = jax.random.uniform(kx, (B, INPUT_SIZE), dtype=jnp.float32)

    # Init mimicking PyTorch Linear default: U(-1/sqrt(in), 1/sqrt(in))
    bound = 1.0 / (INPUT_SIZE ** 0.5)
    weight = jax.random.uniform(
        kw, (OUTPUT_SIZE, INPUT_SIZE), minval=-bound, maxval=bound, dtype=jnp.float32
    )
    bias = jax.random.uniform(
        kb, (OUTPUT_SIZE,), minval=-bound, maxval=bound, dtype=jnp.float32
    )

    def ref_fwd(xv):
        return xv @ weight.T + bias

    # 1) Small-batch gridless path (no padding): the RL action-selection regime.
    q, act = qnet_forward(x, weight, bias)
    jax.block_until_ready((q, act))
    q_ref = ref_fwd(x)
    assert q.shape == (B, OUTPUT_SIZE) and act.shape == (B,)
    assert jnp.allclose(q, q_ref, atol=1e-5, rtol=1e-5), "small-path Q mismatch"
    assert jnp.array_equal(act, jnp.argmax(q, axis=-1).astype(jnp.int32)), \
        "small-path argmax inconsistent with q"
    assert jnp.array_equal(act, jnp.argmax(q_ref, axis=-1).astype(jnp.int32)), \
        "small-path argmax mismatch vs reference"

    # 2) Packed lane-dense path, single block (no batch padding needed).
    B2 = 40
    x2 = jax.random.uniform(jax.random.PRNGKey(1), (B2, INPUT_SIZE), dtype=jnp.float32)
    q2, act2 = qnet_forward(x2, weight, bias, small_batch_cutoff=8)
    jax.block_until_ready((q2, act2))
    q2_ref = ref_fwd(x2)
    assert jnp.allclose(q2, q2_ref, atol=1e-5, rtol=1e-5), "packed Q mismatch"
    assert jnp.array_equal(act2, jnp.argmax(q2, axis=-1).astype(jnp.int32)), \
        "packed argmax inconsistent with q"

    # 3) Packed path with a multi-step 'parallel' grid and a ragged batch size.
    B3 = 322
    x3 = jax.random.uniform(jax.random.PRNGKey(2), (B3, INPUT_SIZE), dtype=jnp.float32)
    q3, act3 = qnet_forward(x3, weight, bias, small_batch_cutoff=8, max_tile_rows=8)
    jax.block_until_ready((q3, act3))
    q3_ref = ref_fwd(x3)
    assert jnp.allclose(q3, q3_ref, atol=1e-5, rtol=1e-5), "tiled packed Q mismatch"
    assert jnp.array_equal(act3, jnp.argmax(q3, axis=-1).astype(jnp.int32)), \
        "tiled packed argmax inconsistent with q"

    print("KERNEL_OK")
</pallas_src>

<mosaic_0001>
module attributes {stable_mosaic.version = 11 : i64} {
  func.func @_qnet_small_kernel(%arg0: memref<2x16xf32, #tpu.memory_space<vmem>>, %arg1: memref<16x4xf32, #tpu.memory_space<vmem>>, %arg2: memref<1x4xf32, #tpu.memory_space<vmem>>, %arg3: memref<2x4xf32, #tpu.memory_space<vmem>>, %arg4: memref<2x1xi32, #tpu.memory_space<vmem>>) attributes {dimension_semantics = [], scalar_prefetch = 0 : i64, scratch_operands = 0 : i64, tpu.core_type = #tpu.core_type<tc>} {
    %c0 = arith.constant 0 : index
    %c0_0 = arith.constant 0 : index
    %0 = vector.load %arg0[%c0, %c0_0] : memref<2x16xf32, #tpu.memory_space<vmem>>, vector<2x16xf32>
    %c0_1 = arith.constant 0 : index
    %c0_2 = arith.constant 0 : index
    %1 = vector.load %arg1[%c0_1, %c0_2] : memref<16x4xf32, #tpu.memory_space<vmem>>, vector<16x4xf32>
    %cst = arith.constant dense<0.000000e+00> : vector<2x4xf32>
    %2 = tpu.matmul %0, %1, %cst {dimension_numbers = #tpu.dot_dimension_numbers<[1], [0], [0], [1], [0, 0, 1, 1], [], []>} : vector<2x16xf32>, vector<16x4xf32>, vector<2x4xf32> -> vector<2x4xf32>
    %c0_3 = arith.constant 0 : index
    %c0_4 = arith.constant 0 : index
    %3 = vector.load %arg2[%c0_3, %c0_4] : memref<1x4xf32, #tpu.memory_space<vmem>>, vector<1x4xf32>
    %4 = vector.broadcast %3 : vector<1x4xf32> to vector<2x4xf32>
    %5 = arith.addf %2, %4 : vector<2x4xf32>
    %c0_5 = arith.constant 0 : index
    %c0_6 = arith.constant 0 : index
    %6 = vector.load %arg3[%c0_5, %c0_6] : memref<2x4xf32, #tpu.memory_space<vmem>>, vector<2x4xf32>
    tpu.vector_store %arg3[%c0_5, %c0_6], %5 {strides = array<i32>} : memref<2x4xf32, #tpu.memory_space<vmem>>, vector<2x4xf32>,
    %cst_7 = arith.constant dense<0xFF800000> : vector<2xf32>
    %7 = vector.multi_reduction <maximumf>, %5, %cst_7 [1] : vector<2x4xf32> to vector<2xf32>
    %8 = vector.shape_cast %7 : vector<2xf32> to vector<2x1xf32>
    %9 = tpu.iota {dimensions = array<i32: 1>} : vector<2x4xi32>
    %10 = vector.broadcast %8 : vector<2x1xf32> to vector<2x4xf32>
    %11 = arith.cmpf oeq, %5, %10 : vector<2x4xf32>
    %c4_i32 = arith.constant 4 : i32
    %12 = vector.broadcast %c4_i32 : i32 to vector<2x4xi32>
    %13 = arith.select %11, %9, %12 : vector<2x4xi1>, vector<2x4xi32>
    %cst_8 = arith.constant dense<2147483647> : vector<2xi32>
    %14 = vector.multi_reduction <minsi>, %13, %cst_8 [1] : vector<2x4xi32> to vector<2xi32>
    %15 = vector.shape_cast %14 : vector<2xi32> to vector<2x1xi32>
    %c0_9 = arith.constant 0 : index
    %c0_10 = arith.constant 0 : index
    %16 = vector.load %arg4[%c0_9, %c0_10] : memref<2x1xi32, #tpu.memory_space<vmem>>, vector<2x1xi32>
    tpu.vector_store %arg4[%c0_9, %c0_10], %15 {strides = array<i32>} : memref<2x1xi32, #tpu.memory_space<vmem>>, vector<2x1xi32>,
    return
  }
}

</mosaic_0001>

<bundles_post_ra>
// kernel: qnet_forward.1
= control target key start
LH: loop header
LB: loop body
LE: loop exit
PB: predicated region body
PF: predicated region fallthrough
CT: control target
= control target key end

     0   :  { %v182_v1 = vmov 0.0   ;;  %vm183_vm0 = vmmov 0   ;;  %s228_s0 = inlined_call_operand.vmem [shape: f32[2,16], index: 0, kind: input, shape index: {}]   ;;  %s229_s1 = inlined_call_operand.vmem [shape: f32[16,4], index: 1, kind: input, shape index: {}]   ;;  %s230_s2 = inlined_call_operand.vmem [shape: f32[1,4], index: 2, kind: input, shape index: {}]   ;;  %s231_s3 = inlined_call_operand.hbm [shape: f32[2,4], index: 3, kind: output, shape index: {0}]   ;;  %s232_s4 = inlined_call_operand.vmem [shape: s32[2,1], index: 4, kind: output, shape index: {1}]  }
   0x1   :  { %v19_v0 = vld [vmem:[%s229_s1 + $0x8] sm:$0xff]  ;;  %150 = vmatprep.subr.mxu0 %v182_v1  ;;  %v18_v2 = vld [vmem:[%s229_s1] sm:$0xff]  ;;  %154 = vmatprep.mubr.msk.f32.mxu0 %vm183_vm0, %v182_v1 }
   0x2   :  { %10 = vsyncpa [#allocation3], 0  ;;  %151 = vmatpush3.msra.mxu0 %v19_v0  ;;  %v17_v3 = vld [vmem:[%s228_s0] sm:$0x3]  ;;  %vm27_vm1 = vcmask 130048   ;;  %vm101_vm2 = vcmask 25600   ;;  %v106_v9 = vlaneseq }
   0x3   :  { %152 = vmatprep.subr.mxu0 %v182_v1  ;;  %v145_v4 = vld [vmem:[%s230_s2] ss:$0 sm:$0xff]  ;;  %s184_s0 = smov [#allocation2]  }
   0x4   :  { %153 = vmatpush3.msra.mxu0 %v18_v2  ;;  %v107_v10 = vand.u32 127, %v106_v9  ;;  %s133_s1 = sshll.u32 %s184_s0, 4  ;;  %s134_s1 = int_to_ptr.vmem [resolvable:$true] %s133_s1 }
   0x5   :  { %155 = vmatmul.mubr.msk.f32.vlgmr.msra.gmra.mxu0 %vm27_vm1, %v17_v3  ;;  %s160_s2 = scalar_lea.vmem %s134_s1, 32  ;;  %p165_p1 = scmp.lt.s32.totalorder %s134_s1, %s134_s1 }
   0x6   :  { %p161_p0 = scmp.ne.s32.totalorder %s134_s1, %s160_s2  ;;  %p166_p2 = scmp.lt.s32.totalorder %s160_s2, %s160_s2 }
   0x8   :  { %p167_p3 = por %p166_p2, %p165_p1 }
   0xa   :  { %p168_p4 = pnand %p167_p3, %p161_p0 }
  0xc5   :  { %v97_v5 = vpop.f32.mrf.mxu0 }
  0xc6   :  { %v98_v6 = vadd.f32 %v145_v4, %v97_v5 }
  0xc7   :  { %v156_v7 = vpop.f32.mrf.mxu0 }
  0xc8   :  { %v103_v8 = vsel %vm101_vm2, %v98_v6, -inf  ;;  %102 = vst.msk [vmem:[#allocation2] sm:$0x3] %vm101_vm2, %v98_v6 }
  0xc9   :  { %104 = vmax.xlane.f32.xlu0 %v103_v8 }
 0x152   :  { %v105_v11 = vpop.xlane.xlu0 %104 }
 0x153   :  { %vm108_vm3 = vcmp.eq.f32.partialorder %v98_v6, %v105_v11 }
 0x154   :  { %v109_v12 = vsel %vm108_vm3, %v107_v10, 4 }
 0x155   :  { %v110_v13 = vsel %vm101_vm2, %v109_v12, 2147483647 }
 0x156   :  { %v112_v14 = vshra.s32 %v110_v13, 16  ;;  %v111_v16 = vand.u32 65535, %v110_v13 }
 0x158   :  { %v114_v15 = vcvt.s32.f32 %v112_v14  ;;  %v113_v18 = vcvt.s32.f32 %v111_v16 }
 0x15a   :  { %115 = vmin.xlane.f32.xlu0 %v114_v15 }
 0x1e3   :  { %v116_v17 = vpop.xlane.xlu0 %115 }
 0x1e4   :  { %vm117_vm4 = vcmp.eq.f32.partialorder %v114_v15, %v116_v17 }
 0x1e5   :  { %v118_v19 = vsel %vm117_vm4, %v113_v18, inf }
 0x1e6   :  { %119 = vmin.xlane.f32.xlu1 %v118_v19 }
 0x1e7   :  { %171 = shalt.err (!%p168_p4)
}
 0x1e8   :  { %136 = dma.vmem_to_hbm [thread:$0]  %s134_s1, 32, %s231_s3, [#allocation3]   ;;  %v122_v20 = vcvt.f32.s32 %v116_v17  ;;  %vm125_vm5 = vcmask 1024  }
 0x1ea   :  { %v123_v22 = vshll.u32 %v122_v20, 16 }
 0x26f   :  { %v120_v21 = vpop.xlane.xlu1 %119 }
 0x270   :  { %v121_v23 = vcvt.f32.s32 %v120_v21 }
 0x272   :  { %v124_v24 = vadd.s32 %v123_v22, %v121_v23 }
 0x274   :  { %126 = vst.msk [vmem:[%s232_s4] sm:$0x3] %vm125_vm5, %v124_v24 }
 0x275   :  { %180 = dma.done.wait [#allocation3], 32  }
 0x276   :  { %181 = vsyncadd [#allocation3], 4294967264 }
 0x277   :  { %144 = vsyncpa [#allocation3], 1 }

</bundles_post_ra>
